<compile_context>
chip_gen: v7x
topology: tpu7x:2x2x1
jax: 0.10.0
libtpu: 0.0.40
codegen_flags: <defaults>
</compile_context>

<pallas_src>
import math
import functools

import jax
import jax.numpy as jnp
from jax.experimental import pallas as pl
from jax.experimental.pallas import tpu as pltpu


def make_positional_encoding_table(max_len: int, d_model: int,
                                   dtype=jnp.float32) -> jnp.ndarray:
    """Deterministic PE buffer, identical math to the PyTorch __init__."""
    position = jnp.arange(0, max_len, dtype=jnp.float32)[:, None]             # [max_len, 1]
    div_sin = jnp.exp(jnp.arange(0.0, d_model, 2.0, dtype=jnp.float32)
                      / d_model * -math.log(10000.0))
    div_cos = jnp.exp(jnp.arange(1.0, d_model, 2.0, dtype=jnp.float32)
                      / d_model * -math.log(10000.0))
    pe = jnp.zeros((max_len, d_model), dtype=jnp.float32)
    pe = pe.at[:, 0::2].set(jnp.sin(position * div_sin))
    pe = pe.at[:, 1::2].set(jnp.cos(position * div_cos))
    return pe.astype(dtype)                                                   # [max_len, D]


def _pe_dropout_kernel(seed_ref, x_ref, pe_ref, o_ref, *,
                       p: float, training: bool, flat_len: int):
    # x_ref/o_ref: (TB, TL) VMEM tiles of the flattened [B, S*D] tensor.
    # pe_ref: (1, TL) tile of the flattened PE row, broadcast over the batch rows.
    y = x_ref[...] + pe_ref[...]                                              # VPU add

    if training and p > 0.0:
        if p >= 1.0:                                                          # drop everything
            y = jnp.zeros_like(y)
        else:
            tb, tl = o_ref.shape
            li = pl.program_id(0)          # lane-block axis (outer)
            bi = pl.program_id(1)          # batch-block axis (inner)

            # Scalar base offset (hoisted out of per-element math) plus seed key.
            # NOTE: flat index wraps mod 2^32 for >4G-element tensors; acceptable
            # for dropout (masks would correlate only on absurdly large inputs).
            row0 = (bi * tb).astype(jnp.uint32)
            col0 = (li * tl).astype(jnp.uint32)
            base = row0 * jnp.uint32(flat_len) + col0
            key = (seed_ref[0].astype(jnp.uint32) + jnp.uint32(1)) \
                  * jnp.uint32(0x9E3779B9)

            rows = jax.lax.broadcasted_iota(jnp.uint32, (tb, tl), 0)
            cols = jax.lax.broadcasted_iota(jnp.uint32, (tb, tl), 1)
            idx = rows * jnp.uint32(flat_len) + cols + (base + key)

            # Stateless counter-based hash (murmur3 fmix32).
            h = idx
            h = h ^ (h >> jnp.uint32(16))
            h = h * jnp.uint32(0x85EBCA6B)
            h = h ^ (h >> jnp.uint32(13))
            h = h * jnp.uint32(0xC2B2AE35)
            h = h ^ (h >> jnp.uint32(16))

            # Integer threshold compare on the top 24 bits (no float convert):
            # P(keep) = (2^24 - floor(p*2^24)) / 2^24 ~= 1 - p.
            thresh = jnp.int32(int(p * (1 << 24)))
            keep = (h >> jnp.uint32(8)).astype(jnp.int32) >= thresh

            # Scale in f32 to avoid low-precision bias; cast only at the store.
            scale = jnp.float32(1.0 / (1.0 - p))
            y = jnp.where(keep, y.astype(jnp.float32) * scale, jnp.float32(0.0))

    o_ref[...] = y.astype(o_ref.dtype)


def _choose_tiles(B: int, L: int, dtype_bytes: int,
                  budget_bytes: int = 4 * 1024 * 1024):
    """Pick lane-dense (TB, TL) blocks under a VMEM budget.

    TL is a multiple of 128 (or the full L); TB is a multiple of the dtype's
    sublane packing (or the full B). The grid uses pl.cdiv, so neither needs to
    divide the array. If the whole problem would be a single block, split it so
    v7x's two TensorCores both get work.
    """
    budget_elems = max(8 * 128, budget_bytes // max(dtype_bytes, 1))
    sub = max(8, 32 // max(dtype_bytes, 1))       # 8 rows f32, 16 bf16, 32 int8

    # --- lane (last-dim) tile ---
    if L <= 128:
        tl = L                                    # full dim: always legal
    else:
        tl = min(L, max(128, (budget_elems // max(B, 1)) // 128 * 128))

    # --- sublane (batch) tile ---
    if B * tl <= budget_elems:
        tb = B
    else:
        tb = max(sub, (budget_elems // max(tl, 1)) // sub * sub)
        tb = min(tb, B)                           # multiple of sub, or == B

    # --- guarantee >=2 grid steps when splittable (megacore on v7x) ---
    if pl.cdiv(L, tl) * pl.cdiv(B, tb) == 1:
        if tl >= 256:
            tl = max(128, (tl // 2) // 128 * 128)
        elif B > sub:
            new_tb = ((pl.cdiv(B, 2) + sub - 1) // sub) * sub
            if new_tb < B:
                tb = new_tb
    return tb, tl


def positional_encoding_forward(x, pe_table, *, p: float = 0.1,
                                training: bool = True, seed: int = 0,
                                _force_kernel: bool = False):
    """x: [B, S, D]. Returns dropout(x + pe[:S]) with the same shape/dtype."""
    B, S, D = x.shape
    pe = pe_table[:S, :].astype(x.dtype)

    # Eval / p==0: a bare add fuses with neighbouring XLA ops; skip the extra
    # HBM round trip a standalone custom call would force.
    if (not training or p <= 0.0) and not _force_kernel:
        return x + pe[None, :, :]

    L = S * D
    # Flatten so the last (lane) dim is S*D — lane-dense loads/stores even when D < 128.
    x2 = x.reshape(B, L)
    pe2 = pe.reshape(1, L)

    itemsize = jnp.dtype(x.dtype).itemsize
    TB, TL = _choose_tiles(B, L, itemsize)
    num_l = pl.cdiv(L, TL)
    num_b = pl.cdiv(B, TB)

    # Explicit scoped-VMEM limit: double-buffered x + out tiles, pe tile
    # (sublane-padded), plus headroom for compiler scratch.
    tile_bytes = TB * TL * itemsize
    vmem_limit = int(min(40 << 20,
                         max(16 << 20,
                             4 * tile_bytes + 2 * 16 * TL * itemsize + (4 << 20))))

    cost = pl.CostEstimate(
        flops=3 * B * L,                           # add + mask-select + scale
        transcendentals=0,
        bytes_accessed=(2 * B * L + L) * itemsize, # read x, write out, read pe once
    )

    seed_arr = jnp.asarray([seed], dtype=jnp.int32)
    kernel = functools.partial(_pe_dropout_kernel, p=float(p),
                               training=bool(training), flat_len=L)

    out2 = pl.pallas_call(
        kernel,
        out_shape=jax.ShapeDtypeStruct((B, L), x.dtype),
        grid_spec=pltpu.PrefetchScalarGridSpec(
            num_scalar_prefetch=1,                 # seed lives in SMEM
            # Batch axis innermost: the pe block index (0, li) is constant across
            # consecutive steps, so Pallas keeps the pe tile resident (no re-DMA).
            grid=(num_l, num_b),
            in_specs=[
                pl.BlockSpec((TB, TL), lambda li, bi, sref: (bi, li)),   # x tile
                pl.BlockSpec((1, TL), lambda li, bi, sref: (0, li)),     # pe tile
            ],
            out_specs=pl.BlockSpec((TB, TL), lambda li, bi, sref: (bi, li)),
        ),
        compiler_params=pltpu.CompilerParams(
            # Stateless per-element RNG -> no carried state; let megacore split the grid.
            dimension_semantics=("parallel", "parallel"),
            vmem_limit_bytes=vmem_limit,
        ),
        cost_estimate=cost,
    )(seed_arr, x2, pe2)
    return out2.reshape(B, S, D)


if __name__ == "__main__":
    # Module config consistent with the forward: d_model=32, max_len=64.
    d_model, max_len = 32, 64
    batch, seq_len = 2, 8
    dropout_p = 0.1

    key = jax.random.PRNGKey(0)
    x = jax.random.normal(key, (batch, seq_len, d_model), dtype=jnp.float32)
    pe_table = make_positional_encoding_table(max_len, d_model)

    ref = x + pe_table[None, :seq_len, :]

    # 1) Eval mode forced through the Pallas kernel: must match the reference.
    out_eval_k = positional_encoding_forward(x, pe_table, p=dropout_p,
                                             training=False, _force_kernel=True)
    jax.block_until_ready(out_eval_k)
    assert out_eval_k.shape == (batch, seq_len, d_model)
    assert jnp.allclose(out_eval_k, ref, atol=1e-6), "PE add mismatch (kernel)"

    # 2) Eval mode via the fused-XLA fast path (default wrapper behavior).
    out_eval = positional_encoding_forward(x, pe_table, p=dropout_p, training=False)
    jax.block_until_ready(out_eval)
    assert jnp.allclose(out_eval, ref, atol=1e-6), "PE add mismatch (bypass)"

    # 3) Training mode: dropped elements are exactly 0; kept are (x+pe)/(1-p).
    out_train = positional_encoding_forward(x, pe_table, p=dropout_p,
                                            training=True, seed=0)
    jax.block_until_ready(out_train)
    assert out_train.shape == (batch, seq_len, d_model)
    kept = out_train != 0.0
    assert jnp.allclose(jnp.where(kept, out_train, 0.0),
                        jnp.where(kept, ref / (1.0 - dropout_p), 0.0),
                        atol=1e-5), "dropout scaling mismatch"
    drop_frac = float(1.0 - jnp.mean(kept.astype(jnp.float32)))
    assert 0.0 <= drop_frac <= 0.5, f"implausible dropout fraction {drop_frac}"

    print("KERNEL_OK")
</pallas_src>

<mosaic_0001>
module attributes {stable_mosaic.version = 11 : i64} {
  func.func @_pe_dropout_kernel(%arg0: i32, %arg1: i32, %arg2: memref<1xi32, #tpu.memory_space<smem>>, %arg3: memref<2x128xf32, #tpu.memory_space<vmem>>, %arg4: memref<1x128xf32, #tpu.memory_space<vmem>>, %arg5: memref<2x128xf32, #tpu.memory_space<vmem>>) attributes {dimension_semantics = [#tpu.dimension_semantics<parallel>, #tpu.dimension_semantics<parallel>], iteration_bounds = array<i64: 2, 1>, scalar_prefetch = 1 : i64, scratch_operands = 0 : i64, tpu.core_type = #tpu.core_type<tc>, window_params = [{transform_indices = @transform_0, window_bounds = array<i64: 2, 128>}, {transform_indices = @transform_1, window_bounds = array<i64: 1, 128>}, {transform_indices = @transform_2, window_bounds = array<i64: 2, 128>}]} {
    %c0 = arith.constant 0 : index
    %c0_0 = arith.constant 0 : index
    %0 = vector.load %arg3[%c0, %c0_0] : memref<2x128xf32, #tpu.memory_space<vmem>>, vector<2x128xf32>
    %c0_1 = arith.constant 0 : index
    %c0_2 = arith.constant 0 : index
    %1 = vector.load %arg4[%c0_1, %c0_2] : memref<1x128xf32, #tpu.memory_space<vmem>>, vector<1x128xf32>
    %2 = vector.broadcast %1 : vector<1x128xf32> to vector<2x128xf32>
    %3 = arith.addf %0, %2 : vector<2x128xf32>
    %c0_3 = arith.constant 0 : index
    %c0_4 = arith.constant 0 : index
    %4 = vector.load %arg5[%c0_3, %c0_4] : memref<2x128xf32, #tpu.memory_space<vmem>>, vector<2x128xf32>
    tpu.vector_store %arg5[%c0_3, %c0_4], %3 {strides = array<i32>} : memref<2x128xf32, #tpu.memory_space<vmem>>, vector<2x128xf32>,
    return
  }
  func.func @transform_0(%arg0: i32, %arg1: i32, %arg2: memref<1xi32, #tpu.memory_space<smem>>) -> (i32, i32) {
    %c0_i32 = arith.constant 0 : i32
    return %arg1, %arg0 : i32, i32
  }
  func.func @transform_1(%arg0: i32, %arg1: i32, %arg2: memref<1xi32, #tpu.memory_space<smem>>) -> (i32, i32) {
    %c0_i32 = arith.constant 0 : i32
    %c0_i32_0 = arith.constant 0 : i32
    return %c0_i32, %arg0 : i32, i32
  }
  func.func @transform_2(%arg0: i32, %arg1: i32, %arg2: memref<1xi32, #tpu.memory_space<smem>>) -> (i32, i32) {
    %c0_i32 = arith.constant 0 : i32
    return %arg1, %arg0 : i32, i32
  }
}

</mosaic_0001>

<bundles_post_ra>
// kernel: tpu_custom_call.1
= control target key start
LH: loop header
LB: loop body
LE: loop exit
PB: predicated region body
PF: predicated region fallthrough
CT: control target
= control target key end

     0   :  { %9 = vsyncpa [#allocation5], 0  ;;  %s699_s0 = inlined_call_operand.<no memory space> [shape: s32[1], index: 0, kind: input, shape index: {}]   ;;  %s700_s1 = inlined_call_operand.hbm [shape: f32[2,256], index: 1, kind: input, shape index: {}]   ;;  %s701_s2 = inlined_call_operand.vmem [shape: f32[1,256], index: 2, kind: input, shape index: {}]   ;;  %s702_s3 = inlined_call_operand.hbm [shape: f32[2,256], index: 3, kind: output, shape index: {}]  }
   0x1   :  { %11 = vsyncpa [#allocation5 + $0x1], 0 }
   0x2   :  { %12 = vsyncpa [#allocation6], 0 }
   0x3   :  { %14 = vsyncpa [#allocation6 + $0x1], 0  ;;  %s522_s12 = smov 0   ;;  %s524_s13 = smov 0  }
   0x4   :  { %s526_s14 = smov 0   ;;  %s528_s0 = smov 0  }
   0x5   :  { %s530_s15 = smov 0   ;;  %s532_s16 = smov 0  }
   0x6 LB: > { %s310_s17 = sadd.s32 4294967295, %s498_s16   ;;  %s311_s18 = sadd.s32 4294967294, %s498_s16   ;;  %s498_s16 = sphi %s532_s16, %s20_s16   ;;  %s494_s15 = sphi %s530_s15, %s718_s15   ;;  %s490_s0 = sphi %s528_s0, %s717_s0   ;;  %s486_s14 = sphi %s526_s14, %s716_s14   ;;  %s482_s13 = sphi %s524_s13, %s715_s13   ;;  %s478_s12 = sphi %s522_s12, %s714_s12  }
   0x7   : > { %s32_s19 = sadd.s32 1, %s494_s15  ;;  %s41_s20 = sadd.s32 1, %s486_s14 }
   0x8   : > { %p34_p0 = scmp.ge.s32.totalorder %s32_s19, 2  ;;  %p48_p1 = scmp.ne.s32.totalorder %s486_s14, %s482_s13 }
   0x9   : > { %p49_p2 = scmp.eq.s32.totalorder %s498_s16, 0  ;;  %p54_p3 = scmp.ne.s32.totalorder %s482_s13, %s478_s12 }
   0xa   : > { %s720_s19 = smov (%p34_p0, %s32_s19), 0  ;;  %p55_p5 = scmp.eq.s32.totalorder %s310_s17, 0 }
   0xb   : > { %p563_p4 = por %p49_p2, %p48_p1  ;;  %s37_s22 = ssub.s32 %s494_s15, %s720_s19 }
   0xc   : > { %p106_p6 = scmp.eq.s32.totalorder %s310_s17, 1  ;;  %p39_p7 = scmp.eq.s32.totalorder %s37_s22, 0 }
   0xd   : > { %p569_p8 = por %p55_p5, %p54_p3  ;;  %p112_p10 = scmp.eq.s32.totalorder %s311_s18, 1 }
   0xe   : > { %p573_p9 = por %p106_p6, %p48_p1  ;;  %p336_p13 = scmp.lt.s32.totalorder %s498_s16, 2 }
   0xf   : > { %s578_s25 = scalar_select %p39_p7, %s486_s14, %s41_s20  }
  0x10   : > { %s706_s24 = scalar_select %p573_p9, 1, 0 }
  0x11   : > { %p580_p11 = por %p112_p10, %p54_p3  ;;  %s132_s27 = sand.u32 1, %s486_s14  }
  0x12   : > { %s314_s28 = sshll.u32 %s132_s27, 1  ;;  %s315_s29 = sshll.u32 %s494_s15, 5 }
  0x13   : > { %s707_s26 = scalar_select %p580_p11, 1, 0 }
  0x14   : > { %s591_s5 = scalar_lea.hbm %s700_s1, %s315_s29  ;;  %s136_s6 = scalar_lea.vmem [#allocation4], %s314_s28 }
  0x15   : > { %s145_s7 = sshll.u32 %s136_s6, 4  ;;  %p597_p0 = pnand %p336_p13, %p563_p4  ;;  %s593_s7 = int_to_ptr.vmem [resolvable:$true] %s145_s7 }
  0x16   : > { %s133_s9 = scalar_lea.sflag [#allocation5], %s132_s27  ;;  %s386_s10 = scalar_lea.hbm %s591_s5, 32 }
  0x17   : > { %p387_p3 = scmp.ne.s32.totalorder %s591_s5, %s386_s10  ;;  %p388_p5 = pneg %p597_p0 }
  0x18   : > { %s391_s18 = scalar_lea.hbm %s700_s1, 64  ;;  %p392_p4 = scmp.lt.u32.totalorder %s591_s5, %s700_s1 }
  0x19   : > { %p389_p6 = pnand %p388_p5, %p387_p3  ;;  %p393_p10 = scmp.lt.u32.totalorder %s391_s18, %s386_s10 }
  0x1a   : > { %p395_p12 = scmp.lt.u32.totalorder %s386_s10, %s591_s5 }
  0x1b   : > { %p390_p7 = pneg %p389_p6  ;;  %p394_p13 = por %p393_p10, %p392_p4 }
  0x1d   : > { %p396_p1 = por %p395_p12, %p394_p13 }
  0x1f   : > { %p397_p2 = pnand %p396_p1, %p390_p7 }
  0x21   : > { %400 = shalt.err (!%p397_p2)
}
  0x22   : > { %s401_s22 = scalar_lea.vmem %s593_s7, 32  ;;  %s500_s27 = smov [#allocation4]  }
  0x23   : > { %p402_p3 = scmp.ne.s32.totalorder %s593_s7, %s401_s22  ;;  %s406_s28 = sshll.u32 %s500_s27, 4  ;;  %s407_s28 = int_to_ptr.vmem [resolvable:$false] %s406_s28 }
  0x24   : > { %s408_s29 = scalar_lea.vmem %s407_s28, 64  ;;  %p409_p9 = scmp.lt.s32.totalorder %s593_s7, %s407_s28 }
  0x25   : > { %p404_p6 = pnand %p402_p3, %p388_p5  ;;  %p410_p4 = scmp.lt.s32.totalorder %s408_s29, %s401_s22 }
  0x27   : > { %p405_p11 = pneg %p404_p6  ;;  %p411_p10 = por %p410_p4, %p409_p9 }
  0x29   : > { %p412_p12 = pnand %p411_p10, %p405_p11 }
  0x2b   : > { %415 = shalt.err (!%p412_p12)
}
  0x2c   : > { %331 = dma.hbm_to_vmem [thread:$0]  (!%p597_p0), %s591_s5, 32, %s593_s7, %s133_s9  }
  0x2d   : > { %p709_p1 = scmp.lt.s32.totalorder %s498_s16, 3  ;;  %p710_p2 = scmp.ge.s32.totalorder %s498_s16, 1 }
  0x2f   : > { %p157_p5 = pnand %p710_p2, %p709_p1 }
  0x30   : > { %s633_s30 = sand.u32 (!%p157_p5), 1, %s482_s13  }
  0x31   : > { %160 = sbr.rel (%p157_p5) target bundleno = 85 (0x55), region = 28  ;;  %s317_s4 = sshll.u32 (!%p157_p5), %s633_s30, 1 }
  0x32   : > { %s163_s6 = scalar_lea.sflag (!%p157_p5), [#allocation5], %s633_s30  ;;  %s166_s10 = scalar_lea.vmem (!%p157_p5), [#allocation4], %s317_s4 }
  0x38   : > { %469 = dma.done.wait (%p569_p8), %s163_s6, 32  }
  0x39   : > { %471 = vsyncadd (%p569_p8), %s163_s6, 4294967264  ;;  %p190_p9 = scmp.lt.s32.totalorder %s490_s0, 1  ;;  %s189_s11 = scalar_lea.vmem [#allocation7], %s317_s4  ;;  %v193_v0 = vld [vmem:[%s166_s10] sm:$0x3] }
  0x3a   : > { %s219_s17 = sshll.u32 %s189_s11, 4  ;;  %s321_s18 = sshll.u32 %s490_s0, 5  ;;  %s647_s17 = int_to_ptr.vmem [resolvable:$true] %s219_s17 }
  0x3b   : > { %s191_s5 = scalar_select %p190_p9, %s490_s0, 1 }
  0x3c   : > { %s652_s21 = scalar_lea.hbm %s702_s3, %s321_s18  ;;  %s204_s22 = scalar_lea.sflag [#allocation6], %s633_s30 }
  0x3d   : > { %s192_s9 = scalar_lea.vmem %s701_s2, %s191_s5  ;;  %s416_s27 = scalar_lea.vmem %s647_s17, 32 }
  0x3e   : > { %v319_v1 = vld [vmem:[%s192_s9] ss:$0 sm:$0xff]  ;;  %p417_p8 = scmp.ne.s32.totalorder %s647_s17, %s416_s27  ;;  %p711_p11 = scmp.ne.s32.totalorder %s706_s24, 0 }
  0x3f   : > { %v201_v2 = vadd.f32 %v319_v1, %v193_v0  ;;  %s501_s0 = smov [#allocation7]  }
  0x40   : > { %p418_p0 = pnand %p417_p8, %p711_p11  ;;  %s420_s28 = sshll.u32 %s501_s0, 4  ;;  %s421_s28 = int_to_ptr.vmem [resolvable:$false] %s420_s28 }
  0x41   : > { %202 = vst [vmem:[%s189_s11] sm:$0x3] %v201_v2  ;;  %s422_s29 = scalar_lea.vmem %s421_s28, 64  ;;  %p423_p13 = scmp.lt.s32.totalorder %s647_s17, %s421_s28 }
  0x42   : > { %p419_p7 = pneg %p418_p0  ;;  %p424_p3 = scmp.lt.s32.totalorder %s422_s29, %s416_s27 }
  0x44   : > { %p425_p6 = por %p424_p3, %p423_p13 }
  0x46   : > { %p426_p4 = pnand %p425_p6, %p419_p7 }
  0x48   : > { %429 = shalt.err (!%p426_p4)
}
  0x49   : > { %s430_s30 = scalar_lea.hbm %s652_s21, 32  ;;  %s434_s10 = scalar_lea.hbm %s702_s3, 64 }
  0x4a   : > { %p431_p10 = scmp.ne.s32.totalorder %s652_s21, %s430_s30  ;;  %p435_p2 = scmp.lt.u32.totalorder %s652_s21, %s702_s3 }
  0x4b   : > { %p436_p5 = scmp.lt.u32.totalorder %s434_s10, %s430_s30  ;;  %p438_p8 = scmp.lt.u32.totalorder %s430_s30, %s652_s21 }
  0x4c   : > { %p432_p12 = pnand %p431_p10, %p711_p11 }
  0x4d   : > { %p437_p9 = por %p436_p5, %p435_p2 }
  0x4e   : > { %p433_p1 = pneg %p432_p12 }
  0x4f   : > { %p439_p0 = por %p438_p8, %p437_p9 }
  0x51   : > { %p440_p7 = pnand %p439_p0, %p433_p1 }
  0x53   : > { %443 = shalt.err (!%p440_p7)
}
  0x54   : > { %326 = dma.vmem_to_hbm [thread:$0]  (%p711_p11), %s647_s17, 32, %s652_s21, %s204_s22  }
  0x55 PF: > { %s231_s8 = sand.u32 1, %s478_s12   ;;  %p712_p13 = scmp.ne.s32.totalorder %s707_s26, 0 }
  0x56   : > { %p713_p3 = scmp.ge.s32.totalorder %s498_s16, 2  ;;  %s232_s9 = scalar_lea.sflag [#allocation6], %s231_s8 }
  0x58   : > { %p333_p6 = pnand %p713_p3, %p712_p13 }
  0x5a   : > { %473 = dma.done.wait (!%p333_p6), %s232_s9, 32  }
  0x5b   : > { %475 = vsyncadd (!%p333_p6), %s232_s9, 4294967264  ;;  %s20_s16 = sadd.s32 1, %s498_s16   ;;  %s714_s12 = smov %s482_s13 }
  0x5c   : > { %p17_p4 = scmp.ge.s32.totalorder %s20_s16, 4   ;;  %s715_s13 = smov %s486_s14 }
  0x5d   : > { %s716_s14 = smov %s578_s25  ;;  %s717_s0 = smov %s494_s15 }
  0x5e   : > { %s718_s15 = smov %s720_s19  ;;  %19 = sbr.rel (!%p17_p4) target bundleno = 6 (0x6), region = 76 }
  0x65   :  { %237 = vsyncpa [#allocation5], 1 }
  0x66   :  { %239 = vsyncpa [#allocation5 + $0x1], 1 }
  0x67   :  { %240 = vsyncpa [#allocation6], 1 }
  0x68   :  { %242 = vsyncpa [#allocation6 + $0x1], 1 }

</bundles_post_ra>
